<compile_context>
chip_gen: v5e
topology: v5e:2x2
jax: 0.10.0
libtpu: 0.0.40
codegen_flags: <defaults>
</compile_context>

<pallas_src>
import math

import jax
import jax.numpy as jnp
import numpy as np
from jax.experimental import pallas as pl
from jax.experimental.pallas import tpu as pltpu

EPSILON = 1e-5


# ----------------------------- parameter setup ------------------------------ #
def init_window(wnd: str, frame_len: int) -> jnp.ndarray:
    """Periodic window coefficients (matches torch periodic windows)."""
    n = jnp.arange(frame_len, dtype=jnp.float32)
    hann = 0.5 - 0.5 * jnp.cos(2.0 * jnp.pi * n / frame_len)
    if wnd == "sqrthann":
        return jnp.sqrt(hann)
    if wnd == "hann":
        return hann
    if wnd == "rect":
        return jnp.ones((frame_len,), jnp.float32)
    raise ValueError(f"Unsupported window in this script: {wnd}")


def init_kernel(frame_len: int,
                frame_hop: int,
                window: jnp.ndarray,
                round_pow_of_two: bool = True,
                normalized: bool = False,
                inverse: bool = False,
                mode: str = "librosa"):
    """Build the (2B, B) STFT transform matrix: [cos-rows; -sin-rows] * window.

    Reproduces the torch init_kernel semantics: row k of the real half is
    cos(2*pi*k*n/B)*w[n], row k of the imag half is -sin(2*pi*k*n/B)*w[n]
    (the cos/sin kernels are symmetric in k<->n, so this matches the torch
    transpose/reshape exactly).
    """
    B = 2 ** math.ceil(math.log2(frame_len)) if round_pow_of_two else frame_len
    if mode == "librosa" and B != frame_len:
        lpad = (B - frame_len) // 2
        window = jnp.pad(window, (lpad, B - frame_len - lpad))
    S = B ** 0.5 if normalized else 1.0
    k = jnp.arange(B, dtype=jnp.float32)
    n = jnp.arange(B, dtype=jnp.float32)
    ang = 2.0 * jnp.pi * jnp.outer(k, n) / B
    real = jnp.cos(ang) / S
    imag = -jnp.sin(ang) / S
    if inverse and not normalized:
        real = real / B
        imag = imag / B
    K = jnp.concatenate([real * window[None, :], imag * window[None, :]], axis=0)
    return K.astype(jnp.float32), window.astype(jnp.float32)  # (2B, B), (B,)


# ------------------------------ Pallas kernel ------------------------------- #
def _stft_matmul_kernel(kos_ref, frames_ref, out_ref):
    # kos_ref:    (F_pad, B)   -- onesided DFT rows (real bins then imag bins),
    #                             VMEM-resident across all M-tiles.
    # frames_ref: (B, TM)      -- B samples per frame x TM frames (lane-dense).
    # out_ref:    (F_pad, TM)  -- freq on sublanes, time on 128-lane axis
    #                             -> unmasked full-lane stores.
    out_ref[...] = jnp.dot(kos_ref[...], frames_ref[...],
                           preferred_element_type=jnp.float32)


def _extract_frames_T(wav_flat: jnp.ndarray, B: int, frame_hop: int):
    """(NC, S) -> (B, NC*T) overlapping frames, time-major on the last axis."""
    NC, S = wav_flat.shape
    T = (S - B) // frame_hop + 1
    if B == 2 * frame_hop and S % frame_hop == 0:
        # Two half-overlapping reshaped views (no duplicating XLA gather).
        chunks = wav_flat.reshape(NC, S // frame_hop, frame_hop)
        frames = jnp.concatenate([chunks[:, :T, :], chunks[:, 1:T + 1, :]],
                                 axis=-1)                       # (NC, T, B)
    else:
        # TODO(synk): general hop/frame-length ratios fall back to an XLA gather.
        idx = frame_hop * jnp.arange(T)[:, None] + jnp.arange(B)[None, :]
        frames = wav_flat[:, idx]                                # (NC, T, B)
    # One XLA transpose pass (same bytes the frame materialization costs anyway);
    # gives the kernel a lane-dense (B, M) rhs and removes any in-kernel transpose.
    frames_T = jnp.moveaxis(frames, -1, 0).reshape(B, NC * T)    # (B, M)
    return frames_T, T


def stft_forward(wav: jnp.ndarray,
                 K: jnp.ndarray,
                 frame_hop: int,
                 onesided: bool = True,
                 center: bool = False,
                 output: str = "complex",
                 max_m_tile: int = 4096):
    """Equivalent of STFT.forward(wav, output=...): N x (C) x S -> N x (C) x F x T."""
    if output not in ("polar", "complex", "real"):
        raise ValueError(f"Unknown output format: {output}")
    wav_dim = wav.ndim
    assert wav_dim in (2, 3)
    N, S = wav.shape[0], wav.shape[-1]
    wav_flat = wav.reshape(-1, S).astype(jnp.float32)  # (NC, S)
    NC = wav_flat.shape[0]
    two_B, B = K.shape
    num_bins = B // 2 + 1

    if center:
        pad = B // 2
        wav_flat = jnp.pad(wav_flat, ((0, 0), (pad, pad)), mode="reflect")

    frames_T, T = _extract_frames_T(wav_flat, B, frame_hop)   # (B, M)
    M = NC * T

    # Keep only the rows we will actually return (onesided: real 0..B/2, imag 0..B/2).
    if onesided:
        K_rows = jnp.concatenate([K[:num_bins], K[B:B + num_bins]], axis=0)
        F = 2 * num_bins
    else:
        K_rows = K
        F = two_B
    F_pad = ((F + 7) // 8) * 8                     # sublane-aligned rows
    if F_pad != F:
        K_rows = jnp.pad(K_rows, ((0, F_pad - F), (0, 0)))

    # M (batch*time) lives on the 128-lane axis; tile it for long audio.
    # TM=4096 f32 keeps per-buffer VMEM < 1 MiB (frames 256 KiB + out 384 KiB,
    # double-buffered) -> comfortable even under v7x's 64 MiB VMEM / default limits,
    # while amortizing the ~0.35 us/grid-step overhead.
    LANE = 128
    M_lane = pl.cdiv(M, LANE) * LANE
    TM = min(max_m_tile, M_lane)
    M_pad = pl.cdiv(M, TM) * TM
    if M_pad != M:
        frames_T = jnp.pad(frames_T, ((0, 0), (0, M_pad - M)))

    out = pl.pallas_call(
        _stft_matmul_kernel,
        out_shape=jax.ShapeDtypeStruct((F_pad, M_pad), jnp.float32),
        grid_spec=pltpu.PrefetchScalarGridSpec(
            num_scalar_prefetch=0,
            grid=(M_pad // TM,),
            in_specs=[
                pl.BlockSpec((F_pad, B), lambda i: (0, 0)),   # DFT rows: VMEM-resident
                pl.BlockSpec((B, TM), lambda i: (0, i)),      # lane-dense frame tile
            ],
            out_specs=pl.BlockSpec((F_pad, TM), lambda i: (0, i)),
        ),
        compiler_params=pltpu.CompilerParams(
            dimension_semantics=("parallel",)),
    )(K_rows, frames_T)

    # (F_pad, M_pad) -> (NC, F, T)  (tiny layout fix-up; the big transpose is gone)
    packed = out[:F, :M].reshape(F, NC, T)
    packed = jnp.moveaxis(packed, 1, 0)
    if wav_dim == 3:
        packed = packed.reshape(N, -1, F, T)

    half = F // 2
    real = packed[..., :half, :]
    imag = packed[..., half:, :]

    if output == "complex":
        return real, imag
    elif output == "real":
        return jnp.stack([real, imag], axis=-1)
    else:  # polar
        mag = jnp.sqrt(real ** 2 + imag ** 2 + EPSILON)
        pha = jnp.arctan2(imag, real)
        return mag, pha


# ---------------------------------- main ------------------------------------ #
if __name__ == "__main__":
    # TODO(synk): pre_emphasis > 0 path (tf.unfold + in-place diff variant) not
    # implemented; the module default (pre_emphasis=0, conv1d path) is reproduced.
    frame_len, frame_hop = 16, 8
    N, C, S = 2, 4, 128

    key = jax.random.PRNGKey(0)
    wav = jax.random.normal(key, (N, C, S), dtype=jnp.float32)

    window = init_window("sqrthann", frame_len)
    K, _ = init_kernel(frame_len, frame_hop, window,
                       round_pow_of_two=True, normalized=False,
                       inverse=False, mode="librosa")

    real, imag = stft_forward(wav, K, frame_hop, onesided=True,
                              center=False, output="complex")
    jax.block_until_ready((real, imag))

    # Sanity check against a pure-JAX reference of the same math.
    two_B, B = K.shape
    T = (S - B) // frame_hop + 1
    idx = frame_hop * jnp.arange(T)[:, None] + jnp.arange(B)[None, :]
    frames_ref = wav.reshape(-1, S)[:, idx]                      # (NC, T, B)
    packed_ref = jnp.einsum("ntb,fb->nft", frames_ref, K)        # (NC, 2B, T)
    packed_ref = packed_ref.reshape(N, C, two_B, T)
    num_bins = two_B // 4 + 1
    real_ref = packed_ref[..., :B, :][..., :num_bins, :]
    imag_ref = packed_ref[..., B:, :][..., :num_bins, :]

    assert real.shape == (N, C, num_bins, T) and imag.shape == (N, C, num_bins, T)
    np.testing.assert_allclose(np.asarray(real), np.asarray(real_ref), rtol=1e-4, atol=1e-4)
    np.testing.assert_allclose(np.asarray(imag), np.asarray(imag_ref), rtol=1e-4, atol=1e-4)

    print("KERNEL_OK")
</pallas_src>

<mosaic_0001>
module attributes {stable_mosaic.version = 11 : i64} {
  func.func @_stft_matmul_kernel(%arg0: i32, %arg1: memref<24x16xf32, #tpu.memory_space<vmem>>, %arg2: memref<16x128xf32, #tpu.memory_space<vmem>>, %arg3: memref<24x128xf32, #tpu.memory_space<vmem>>) attributes {dimension_semantics = [#tpu.dimension_semantics<parallel>], iteration_bounds = array<i64: 1>, scalar_prefetch = 0 : i64, scratch_operands = 0 : i64, tpu.core_type = #tpu.core_type<tc>, window_params = [{pipeline_mode = #tpu.pipeline_mode<synchronous>, transform_indices = @transform_0, window_bounds = array<i64: 24, 16>}, {transform_indices = @transform_1, window_bounds = array<i64: 16, 128>}, {transform_indices = @transform_2, window_bounds = array<i64: 24, 128>}]} {
    %c0 = arith.constant 0 : index
    %c0_0 = arith.constant 0 : index
    %0 = vector.load %arg1[%c0, %c0_0] : memref<24x16xf32, #tpu.memory_space<vmem>>, vector<24x16xf32>
    %c0_1 = arith.constant 0 : index
    %c0_2 = arith.constant 0 : index
    %1 = vector.load %arg2[%c0_1, %c0_2] : memref<16x128xf32, #tpu.memory_space<vmem>>, vector<16x128xf32>
    %cst = arith.constant dense<0.000000e+00> : vector<24x128xf32>
    %2 = tpu.matmul %0, %1, %cst {dimension_numbers = #tpu.dot_dimension_numbers<[1], [0], [0], [1], [0, 0, 1, 1], [], []>} : vector<24x16xf32>, vector<16x128xf32>, vector<24x128xf32> -> vector<24x128xf32>
    %c0_3 = arith.constant 0 : index
    %c0_4 = arith.constant 0 : index
    %3 = vector.load %arg3[%c0_3, %c0_4] : memref<24x128xf32, #tpu.memory_space<vmem>>, vector<24x128xf32>
    tpu.vector_store %arg3[%c0_3, %c0_4], %2 {strides = array<i32>} : memref<24x128xf32, #tpu.memory_space<vmem>>, vector<24x128xf32>,
    return
  }
  func.func @transform_0(%arg0: i32) -> (i32, i32) {
    %c0_i32 = arith.constant 0 : i32
    %c0_i32_0 = arith.constant 0 : i32
    %c0_i32_1 = arith.constant 0 : i32
    return %c0_i32, %c0_i32_0 : i32, i32
  }
  func.func @transform_1(%arg0: i32) -> (i32, i32) {
    %c0_i32 = arith.constant 0 : i32
    %c0_i32_0 = arith.constant 0 : i32
    return %c0_i32, %arg0 : i32, i32
  }
  func.func @transform_2(%arg0: i32) -> (i32, i32) {
    %c0_i32 = arith.constant 0 : i32
    %c0_i32_0 = arith.constant 0 : i32
    return %c0_i32, %arg0 : i32, i32
  }
}

</mosaic_0001>

<bundles_post_ra>
// kernel: tpu_custom_call.1
= control target key start
LH: loop header
LB: loop body
LE: loop exit
PB: predicated region body
PF: predicated region fallthrough
CT: control target
= control target key end

     0   :  { %vm17_vm0 = vcmask 130048   ;;  %s146_s0 = inlined_call_operand.vmem [shape: f32[24,16], index: 0, kind: input, shape index: {}]   ;;  %s147_s1 = inlined_call_operand.vmem [shape: f32[16,128], index: 1, kind: input, shape index: {}]   ;;  %s148_s2 = inlined_call_operand.hbm [shape: f32[24,128], index: 2, kind: output, shape index: {}]  }
   0x1   :  { %v16_v0 = vld [vmem:[%s147_s1 + $0x8] sm:$0xff]  ;;  %v15_v1 = vld [vmem:[%s147_s1] sm:$0xff]  ;;  %v14_v2 = vld [vmem:[%s146_s0 + $0x10] sm:$0xff] }
   0x2   :  { %78 = vmatpush.msra.mxu2 %v16_v0  ;;  %41 = vmatpush.msra.mxu0 %v16_v0 }
   0x3   :  { %7 = vsyncpa [#allocation3], 0  ;;  %77 = vmatpush.msra.mxu1 %v16_v0  ;;  %v12_v3 = vld [vmem:[%s146_s0] sm:$0xff]  ;;  %v13_v4 = vld [vmem:[%s146_s0 + $0x8] sm:$0xff]  ;;  %s110_s1 = smov [#allocation2]   ;;  %s62_s22 = sshll.u32 %s148_s2, 4  ;;  %s63_s22 = int_to_ptr.hbm [resolvable:$true] %s62_s22 }
   0x4   :  { %80 = vmatpush.msra.mxu2 %v15_v1  ;;  %42 = vmatpush.msra.mxu0 %v15_v1  ;;  %s60_s19 = sshll.u32 %s110_s1, 4  ;;  %s111_s0 = smov 128   ;;  %s61_s19 = int_to_ptr.vmem [resolvable:$true] %s60_s19 }
   0x5   :  { %76 = vmatmul.msk.f32.vlgmr.msra.gmra.mxu2 %vm17_vm0, %v14_v2  ;;  %79 = vmatpush.msra.mxu1 %v15_v1  ;;  %s112_s23 = smov 8  }
   0x6   :  { %74 = vmatmul.msk.f32.vlgmr.msra.gmra.mxu0 %vm17_vm0, %v12_v3  ;;  %75 = vmatmul.msk.f32.vlgmr.msra.gmra.mxu1 %vm17_vm0, %v13_v4 }
  0x83   :  { %v44_v5 = vpop.f32.mrf.mxu0  ;;  %v47_v6 = vpop.f32.mrf.mxu1 }
  0x84   :  { %53 = vst [vmem:[#allocation2] sm:$0xff] %v44_v5 }
  0x85   :  { %54 = vst [vmem:[#allocation2 + $0x8] sm:$0xff] %v47_v6 }
  0x88   :  { %v50_v7 = vpop.f32.mrf.mxu2 }
  0x89   :  { %55 = vst [vmem:[#allocation2 + $0x10] sm:$0xff] %v50_v7 }
  0x8a   :  { %68 = dma.vmem_to_hbm [thread:$0]  %s61_s19, 384, %s63_s22, [#allocation3], %s111_s0, %s111_s0, %s112_s23  }
  0x8b   :  { %108 = dma.done.wait [#allocation3], 384  }
  0x8c   :  { %109 = vsyncadd [#allocation3], 4294966912 }
  0x8d   :  { %73 = vsyncpa [#allocation3], 1 }

</bundles_post_ra>
